<compile_context>
chip_gen: v7x
topology: tpu7x:2x2x1
jax: 0.10.0
libtpu: 0.0.40
codegen_flags: <defaults>
</compile_context>

<pallas_src>
import jax
import jax.numpy as jnp
from jax.experimental import pallas as pl
from jax.experimental.pallas import tpu as pltpu


def feedforward_kernel(x_ref, w1_ref, b1_ref, w2_ref, b2_ref, o_ref):
    # fc1 on the MXU: (tm, D_in) @ (D_in, H), f32 accumulate regardless of input dtype.
    hidden = jnp.dot(x_ref[...], w1_ref[...], preferred_element_type=jnp.float32)
    relu = jnp.maximum(hidden + b1_ref[...], 0.0)              # (tm, H) + (1, H) broadcast

    # fc2 has a single output feature.  Contract it as w2 (1,H) x relu^T (H,tm) so the
    # result is already lane-dense: batch ends up on the 128-lane axis -> (1, tm).
    # (Same contraction pattern as q @ k^T in attention kernels; no masked (tm,1) store,
    #  no separate XLU relayout before the writeback.)
    logit = jnp.einsum("oh,th->ot", w2_ref[...], relu,
                       preferred_element_type=jnp.float32)      # (1, tm)
    logit = logit + b2_ref[0, 0]                                # scalar bias from SMEM

    # Exact sigmoid with a single EUP transcendental (tanh); keeps VALU slots free.
    out = 0.5 * jnp.tanh(0.5 * logit) + 0.5                     # (1, tm)

    # (1, tm) -> (1, 1, tm): only adds a leading unit dim (no relayout); contiguous store.
    o_ref[...] = out.reshape(o_ref.shape).astype(o_ref.dtype)


def _round_up(n, m):
    return ((n + m - 1) // m) * m


def feedforward(x, w1, b1, w2_row, b2, *, max_block_b=4096, matmul_dtype=None):
    """x: (B, D_in); w1: (D_in, H); b1: (1, H); w2_row: (1, H); b2: (1, 1) -> (B, 1)."""
    B, D_in = x.shape
    H = w1.shape[1]
    out_dtype = x.dtype

    # Batch tile: multiple of 8 sublanes, ~ceil(B/2) so big batches give >= 2 grid steps
    # (v7x megacore actually shards the 'parallel' axis), capped so the per-step VMEM
    # footprint stays tiny while steps still amortize the ~0.35us grid-step overhead.
    tm = max(8, min(max_block_b, _round_up(pl.cdiv(B, 2), 8)))
    # Ragged final block is masked by Pallas; no wrapper-side jnp.pad copy of x.
    num_tiles = pl.cdiv(B, tm)

    if matmul_dtype is not None:
        # Optional bf16 MXU inputs for v6e/v7x at scale: halves streamed x bytes; the dot
        # still accumulates in f32 and bias/ReLU/fc2/sigmoid stay f32.
        x = x.astype(matmul_dtype)
        w1 = w1.astype(matmul_dtype)

    itemsize = jnp.dtype(x.dtype).itemsize
    cost = pl.CostEstimate(
        flops=2 * B * D_in * H + 2 * B * H,
        transcendentals=B,
        bytes_accessed=B * D_in * itemsize + D_in * H * itemsize
                       + (2 * H + 1) * 4 + B * 4,
    )

    out = pl.pallas_call(
        feedforward_kernel,
        out_shape=jax.ShapeDtypeStruct((num_tiles, 1, tm), out_dtype),
        grid=(num_tiles,),
        in_specs=[
            # Activations: tiled over batch, streamed/double-buffered by BlockSpec.
            pl.BlockSpec((tm, D_in), lambda i: (i, 0)),
            # Weights & biases: pinned (same block every step) -> stay VMEM-resident.
            pl.BlockSpec((D_in, H), lambda i: (0, 0)),
            pl.BlockSpec((1, H), lambda i: (0, 0)),
            pl.BlockSpec((1, H), lambda i: (0, 0)),
            # (1, 1) bias lives in SMEM: scalar read, no padded VMEM tile / extra DMA.
            pl.BlockSpec(memory_space=pltpu.SMEM),
        ],
        # Lane-dense output: batch on the 128-lane axis, one (1, 1, tm) slab per step.
        out_specs=pl.BlockSpec((1, 1, tm), lambda i: (i, 0, 0)),
        compiler_params=pltpu.CompilerParams(
            dimension_semantics=("parallel",),  # batch axis splits across TCs on v7x
        ),
        cost_estimate=cost,
    )(x, w1, b1, w2_row, b2)

    # (num_tiles, 1, tm) -> (B, 1); rows >= B (ragged final tile) are dropped.
    return out.reshape(num_tiles * tm)[:B].reshape(B, 1)


if __name__ == "__main__":
    # Shapes implied by the module: Feedforward(input_size=16, hidden_size=32), batch=8.
    batch, input_size, hidden_size = 8, 16, 32

    key = jax.random.PRNGKey(0)
    kx, kw1, kb1, kw2, kb2 = jax.random.split(key, 5)

    x = jax.random.normal(kx, (batch, input_size), dtype=jnp.float32)
    # PyTorch Linear weight is (out, in); stored pre-transposed here as (in, out).
    w1 = jax.random.normal(kw1, (input_size, hidden_size), dtype=jnp.float32) * 0.1
    b1 = jax.random.normal(kb1, (1, hidden_size), dtype=jnp.float32) * 0.1
    # fc2 weight kept as a (1, H) row vector.
    w2_row = jax.random.normal(kw2, (1, hidden_size), dtype=jnp.float32) * 0.1
    b2 = jax.random.normal(kb2, (1, 1), dtype=jnp.float32) * 0.1

    out = feedforward(x, w1, b1, w2_row, b2)
    out = jax.block_until_ready(out)

    # Pure-JAX reference. Sigmoid in the kernel is now exact (tanh form); remaining
    # tolerance only covers MXU default-precision f32 matmul rounding.
    ref = jax.nn.sigmoid(jnp.maximum(x @ w1 + b1, 0.0) @ w2_row.T + b2)
    assert out.shape == (batch, 1)
    assert jnp.allclose(out, ref, atol=1e-3, rtol=1e-3), float(jnp.max(jnp.abs(out - ref)))

    print("KERNEL_OK")
</pallas_src>

<mosaic_0001>
module attributes {stable_mosaic.version = 11 : i64} {
  func.func @feedforward_kernel(%arg0: i32, %arg1: memref<8x16xf32, #tpu.memory_space<vmem>>, %arg2: memref<16x32xf32, #tpu.memory_space<vmem>>, %arg3: memref<1x32xf32, #tpu.memory_space<vmem>>, %arg4: memref<1x32xf32, #tpu.memory_space<vmem>>, %arg5: memref<1x1xf32, #tpu.memory_space<smem>>, %arg6: memref<1x1x8xf32, #tpu.memory_space<vmem>>) attributes {dimension_semantics = [#tpu.dimension_semantics<parallel>], iteration_bounds = array<i64: 1>, scalar_prefetch = 0 : i64, scratch_operands = 0 : i64, tpu.core_type = #tpu.core_type<tc>, window_params = [{transform_indices = @transform_0, window_bounds = array<i64: 8, 16>}, {pipeline_mode = #tpu.pipeline_mode<synchronous>, transform_indices = @transform_1, window_bounds = array<i64: 16, 32>}, {pipeline_mode = #tpu.pipeline_mode<synchronous>, transform_indices = @transform_2, window_bounds = array<i64: 1, 32>}, {pipeline_mode = #tpu.pipeline_mode<synchronous>, transform_indices = @transform_3, window_bounds = array<i64: 1, 32>}, {transform_indices = @transform_4, window_bounds = array<i64: 1, 1>}, {transform_indices = @transform_5, window_bounds = array<i64: 1, 1, 8>}]} {
    %c0 = arith.constant 0 : index
    %c0_0 = arith.constant 0 : index
    %0 = vector.load %arg1[%c0, %c0_0] : memref<8x16xf32, #tpu.memory_space<vmem>>, vector<8x16xf32>
    %c0_1 = arith.constant 0 : index
    %c0_2 = arith.constant 0 : index
    %1 = vector.load %arg2[%c0_1, %c0_2] : memref<16x32xf32, #tpu.memory_space<vmem>>, vector<16x32xf32>
    %cst = arith.constant dense<0.000000e+00> : vector<8x32xf32>
    %2 = tpu.matmul %0, %1, %cst {dimension_numbers = #tpu.dot_dimension_numbers<[1], [0], [0], [1], [0, 0, 1, 1], [], []>} : vector<8x16xf32>, vector<16x32xf32>, vector<8x32xf32> -> vector<8x32xf32>
    %c0_3 = arith.constant 0 : index
    %c0_4 = arith.constant 0 : index
    %3 = vector.load %arg3[%c0_3, %c0_4] : memref<1x32xf32, #tpu.memory_space<vmem>>, vector<1x32xf32>
    %4 = vector.broadcast %3 : vector<1x32xf32> to vector<8x32xf32>
    %5 = arith.addf %2, %4 : vector<8x32xf32>
    %cst_5 = arith.constant 0.000000e+00 : f32
    %6 = vector.broadcast %cst_5 : f32 to vector<8x32xf32>
    %7 = arith.maximumf %5, %6 : vector<8x32xf32>
    %c0_6 = arith.constant 0 : index
    %c0_7 = arith.constant 0 : index
    %8 = vector.load %arg4[%c0_6, %c0_7] : memref<1x32xf32, #tpu.memory_space<vmem>>, vector<1x32xf32>
    "tpu.trace_start"() <{level = 10 : i32, message = "oh,th->ot"}> : () -> ()
    %cst_8 = arith.constant dense<0.000000e+00> : vector<1x8xf32>
    %9 = tpu.matmul %8, %7, %cst_8 {dimension_numbers = #tpu.dot_dimension_numbers<[1], [1], [0], [0], [0, 0, 1, 0], [], []>} : vector<1x32xf32>, vector<8x32xf32>, vector<1x8xf32> -> vector<1x8xf32>
    "tpu.trace_stop"() : () -> ()
    %c0_9 = arith.constant 0 : index
    %c0_10 = arith.constant 0 : index
    %10 = memref.load %arg5[%c0_9, %c0_10] : memref<1x1xf32, #tpu.memory_space<smem>>
    %11 = vector.broadcast %10 : f32 to vector<1x8xf32>
    %12 = arith.addf %9, %11 : vector<1x8xf32>
    %cst_11 = arith.constant 5.000000e-01 : f32
    %13 = vector.broadcast %cst_11 : f32 to vector<1x8xf32>
    %14 = arith.mulf %13, %12 : vector<1x8xf32>
    %15 = math.tanh %14 : vector<1x8xf32>
    %cst_12 = arith.constant 5.000000e-01 : f32
    %16 = vector.broadcast %cst_12 : f32 to vector<1x8xf32>
    %17 = arith.mulf %16, %15 : vector<1x8xf32>
    %cst_13 = arith.constant 5.000000e-01 : f32
    %18 = vector.broadcast %cst_13 : f32 to vector<1x8xf32>
    %19 = arith.addf %17, %18 : vector<1x8xf32>
    %20 = vector.shape_cast %19 : vector<1x8xf32> to vector<1x1x8xf32>
    %c0_14 = arith.constant 0 : index
    %c0_15 = arith.constant 0 : index
    %c0_16 = arith.constant 0 : index
    %21 = vector.load %arg6[%c0_14, %c0_15, %c0_16] : memref<1x1x8xf32, #tpu.memory_space<vmem>>, vector<1x1x8xf32>
    tpu.vector_store %arg6[%c0_14, %c0_15, %c0_16], %20 {strides = array<i32>} : memref<1x1x8xf32, #tpu.memory_space<vmem>>, vector<1x1x8xf32>,
    return
  }
  func.func @transform_0(%arg0: i32) -> (i32, i32) {
    %c0_i32 = arith.constant 0 : i32
    %c0_i32_0 = arith.constant 0 : i32
    return %arg0, %c0_i32 : i32, i32
  }
  func.func @transform_1(%arg0: i32) -> (i32, i32) {
    %c0_i32 = arith.constant 0 : i32
    %c0_i32_0 = arith.constant 0 : i32
    %c0_i32_1 = arith.constant 0 : i32
    return %c0_i32, %c0_i32_0 : i32, i32
  }
  func.func @transform_2(%arg0: i32) -> (i32, i32) {
    %c0_i32 = arith.constant 0 : i32
    %c0_i32_0 = arith.constant 0 : i32
    %c0_i32_1 = arith.constant 0 : i32
    return %c0_i32, %c0_i32_0 : i32, i32
  }
  func.func @transform_3(%arg0: i32) -> (i32, i32) {
    %c0_i32 = arith.constant 0 : i32
    %c0_i32_0 = arith.constant 0 : i32
    %c0_i32_1 = arith.constant 0 : i32
    return %c0_i32, %c0_i32_0 : i32, i32
  }
  func.func @transform_4(%arg0: i32) -> (i32, i32) {
    %c0_i32 = arith.constant 0 : i32
    %c0_i32_0 = arith.constant 0 : i32
    %c0_i32_1 = arith.constant 0 : i32
    return %c0_i32, %c0_i32_0 : i32, i32
  }
  func.func @transform_5(%arg0: i32) -> (i32, i32, i32) {
    %c0_i32 = arith.constant 0 : i32
    %c0_i32_0 = arith.constant 0 : i32
    %c0_i32_1 = arith.constant 0 : i32
    return %arg0, %c0_i32, %c0_i32_0 : i32, i32, i32
  }
}

</mosaic_0001>

<bundles_post_ra>
// kernel: tpu_custom_call.1
= control target key start
LH: loop header
LB: loop body
LE: loop exit
PB: predicated region body
PF: predicated region fallthrough
CT: control target
= control target key end

     0   :  { %11 = vsyncpa [#allocation4], 0  ;;  %s431_s0 = inlined_call_operand.hbm [shape: f32[8,16], index: 0, kind: input, shape index: {}]   ;;  %s432_s1 = inlined_call_operand.hbm [shape: f32[16,32], index: 1, kind: input, shape index: {}]   ;;  %s433_s2 = inlined_call_operand.vmem [shape: f32[1,32], index: 2, kind: input, shape index: {}]   ;;  %s434_s3 = inlined_call_operand.vmem [shape: f32[1,32], index: 3, kind: input, shape index: {}]   ;;  %s435_s4 = inlined_call_operand.<no memory space> [shape: f32[1,1], index: 4, kind: input, shape index: {}]   ;;  %s436_s5 = inlined_call_operand.hbm [shape: f32[1,1,8], index: 5, kind: output, shape index: {}]  }
   0x1   :  { %12 = vsyncpa [#allocation7], 0 }
   0x2   :  { %13 = vsyncpa [#allocation5], 0  ;;  %s341_s18 = smov [#allocation3]   ;;  %s342_s20 = smov [#allocation6]  }
   0x3   :  { %s20_s19 = sshll.u32 %s341_s18, 4  ;;  %s29_s21 = sshll.u32 %s342_s20, 4  ;;  %s21_s19 = int_to_ptr.vmem [resolvable:$true] %s20_s19  ;;  %s379_s21 = int_to_ptr.vmem [resolvable:$true] %s29_s21 }
   0x4   :  { %s269_s24 = scalar_lea.hbm %s431_s0, 128 }
   0x5   :  { %p270_p0 = scmp.ne.s32.totalorder %s431_s0, %s269_s24  ;;  %p273_p1 = scmp.lt.u32.totalorder %s269_s24, %s431_s0 }
   0x7   :  { %p275_p2 = pnand %p273_p1, %p270_p0 }
   0x9   :  { %278 = shalt.err (!%p275_p2)
}
   0xa   :  { %s279_s29 = scalar_lea.vmem %s21_s19, 128  ;;  %p284_p4 = scmp.lt.s32.totalorder %s21_s19, %s21_s19 }
   0xb   :  { %p280_p3 = scmp.ne.s32.totalorder %s21_s19, %s279_s29  ;;  %p285_p5 = scmp.lt.s32.totalorder %s279_s29, %s279_s29 }
   0xd   :  { %p286_p6 = por %p285_p5, %p284_p4 }
   0xf   :  { %p287_p7 = pnand %p286_p6, %p280_p3 }
  0x11   :  { %290 = shalt.err (!%p287_p7)
}
  0x12   :  { %23 = dma.hbm_to_vmem [thread:$0]  %s431_s0, 128, %s21_s19, [#allocation4]  }
  0x13   :  { %s291_s9 = scalar_lea.hbm %s432_s1, 256 }
  0x14   :  { %p292_p8 = scmp.ne.s32.totalorder %s432_s1, %s291_s9  ;;  %p295_p9 = scmp.lt.u32.totalorder %s291_s9, %s432_s1 }
  0x16   :  { %p297_p10 = pnand %p295_p9, %p292_p8 }
  0x18   :  { %300 = shalt.err (!%p297_p10)
}
  0x19   :  { %s301_s14 = scalar_lea.vmem %s379_s21, 256  ;;  %p306_p12 = scmp.lt.s32.totalorder %s379_s21, %s379_s21 }
  0x1a   :  { %p302_p11 = scmp.ne.s32.totalorder %s379_s21, %s301_s14  ;;  %p307_p13 = scmp.lt.s32.totalorder %s301_s14, %s301_s14 }
  0x1c   :  { %p308_p0 = por %p307_p13, %p306_p12 }
  0x1e   :  { %p309_p1 = pnand %p308_p0, %p302_p11 }
  0x20   :  { %312 = shalt.err (!%p309_p1)
}
  0x21   :  { %s343_s0 = smov 128   ;;  %s344_s15 = smov 8  }
  0x22   :  { %35 = dma.hbm_to_vmem [thread:$0]  %s432_s1, 256, %s379_s21, [#allocation7], %s343_s0, %s343_s0, %s344_s15  }
  0x23   :  { %335 = dma.done.wait [#allocation4], 128  }
  0x24   :  { %336 = vsyncadd [#allocation4], 4294967168 }
  0x25   :  { %337 = dma.done.wait [#allocation7], 256  }
  0x26   :  { %338 = vsyncadd [#allocation7], 4294967040  ;;  %v345_v0 = vmov 0.0|0.0   ;;  %vm346_vm0 = vmmov 0   ;;  %v347_v1 = vmov 0.0   ;;  %v49_v2 = vld [vmem:[#allocation6] sm:$0xff]  ;;  %v135_v12 = vstv %s435_s4 }
  0x27   :  { %256 = vmatprep.subr.bf16.mxu0 %v345_v0  ;;  %248 = vmatprep.mubr.msk.f32.mxu0 %vm346_vm0, %v347_v1  ;;  %v50_v3 = vld [vmem:[#allocation6 + $0x8] sm:$0xff]  ;;  %v48_v5 = vld [vmem:[#allocation3] sm:$0xff]  ;;  %vm58_vm1 = vcmask 130048   ;;  %vm136_vm2 = vcmask 261120   ;;  %vm217_vm3 = vcmask 57344  }
  0x28   :  { %251 = vmatprep.subr.mxu1 %v347_v1  ;;  %253 = vmatprep.mubr.msk.f32.mxu1 %vm346_vm0, %v347_v1  ;;  %v257_v4 = vpack.c.bf16 %v50_v3, %v49_v2  ;;  %v235_v6 = vld [vmem:[%s433_s2] ss:$0 sm:$0xff]  ;;  %s348_s2 = smov [#allocation8]  }
  0x29   :  { %v133_v11 = vld [vmem:[%s434_s3] sm:$0x1]  ;;  %s225_s23 = sshll.u32 %s348_s2, 4  ;;  %s226_s23 = int_to_ptr.vmem [resolvable:$true] %s225_s23 }
  0x2a   :  { %258 = vmatpush3.bf16.msra.mxu0 %v257_v4  ;;  %s313_s24 = scalar_lea.vmem %s226_s23, 16  ;;  %s317_s3 = scalar_lea.vmem %s226_s23, 32 }
  0x2b   :  { %p314_p2 = scmp.ne.s32.totalorder %s226_s23, %s313_s24  ;;  %p318_p3 = scmp.lt.s32.totalorder %s226_s23, %s226_s23 }
  0x2c   :  { %p319_p4 = scmp.lt.s32.totalorder %s317_s3, %s313_s24 }
  0x2d   :  { %249 = vmatmul.mubr.msk.f32.vlgmr.msra.gmra.mrb[0].mxu0 %vm58_vm1, %v48_v5 }
  0x2e   :  { %p320_p5 = por %p319_p4, %p318_p3 }
  0x30   :  { %p321_p6 = pnand %p320_p5, %p314_p2 }
 0x100   :  { %v128_v7 = vpop.f32.mrb[0].mxu0 }
 0x101   :  { %v129_v8 = vadd.f32 %v235_v6, %v128_v7  ;;  %v250_v9 = vpop.f32.mrb[1].mxu0 }
 0x103   :  { %v132_v10 = vmax.f32 %v129_v8, 0.0 }
 0x105   :  { %252 = vmatpush3.xpose.msk.msra.mxu1 %vm136_vm2, %v132_v10 }
 0x108   :  { %254 = vmatmul.mubr.msk.f32.vlgmr.msra.gmra.mrb[0].mxu1 %vm136_vm2, %v133_v11 }
 0x1db   :  { %v209_v13 = vpop.f32.mrb[0].mxu1 }
 0x1dc   :  { %v210_v14 = vadd.f32 %v209_v13, %v135_v12  ;;  %v255_v15 = vpop.f32.mrb[1].mxu1 }
 0x1de   :  { %v213_v16 = vmul.f32 0.5, %v210_v14 }
 0x1e0   :  { %267 = vtanh.f32 %v213_v16 }
 0x1ea   :  { %v268_v17 = vpop.eup %267 }
 0x1eb   :  { %v215_v18 = vmul.f32 0.5, %v268_v17 }
 0x1ed   :  { %v216_v19 = vadd.f32 0.5, %v215_v18 }
 0x1ef   :  { %218 = vst.msk [vmem:[#allocation8] sm:$0x1] %vm217_vm3, %v216_v19 }
 0x1f0   :  { %324 = shalt.err (!%p321_p6)
}
 0x1f1   :  { %s325_s26 = scalar_lea.hbm %s436_s5, 16 }
 0x1f2   :  { %p326_p7 = scmp.ne.s32.totalorder %s436_s5, %s325_s26  ;;  %p329_p8 = scmp.lt.u32.totalorder %s325_s26, %s436_s5 }
 0x1f4   :  { %p331_p9 = pnand %p329_p8, %p326_p7 }
 0x1f6   :  { %334 = shalt.err (!%p331_p9)
}
 0x1f7   :  { %228 = dma.vmem_to_hbm [thread:$0]  %s226_s23, 16, %s436_s5, [#allocation5]  }
 0x1f8   :  { %339 = dma.done.wait [#allocation5], 16  }
 0x1f9   :  { %340 = vsyncadd [#allocation5], 4294967280 }
 0x1fa   :  { %232 = vsyncpa [#allocation4], 1 }
 0x1fb   :  { %233 = vsyncpa [#allocation7], 1 }
 0x1fc   :  { %234 = vsyncpa [#allocation5], 1 }

</bundles_post_ra>
